<compile_context>
chip_gen: v6e
topology: v6e:2x2x1
jax: 0.10.0
libtpu: 0.0.40
codegen_flags: <defaults>
</compile_context>

<pallas_src>
import math

import jax
import jax.numpy as jnp
from jax.experimental import pallas as pl
from jax.experimental.pallas import tpu as pltpu


_FALLBACK_HW_VMEM = 64 << 20          # assume the smallest (v7x-class) VMEM if unknown
_CHIP_CONFIG_CACHE = None


def _chip_config():
    """(block_bytes target, base vmem_limit, safe vmem cap, num_cores)."""
    global _CHIP_CONFIG_CACHE
    if _CHIP_CONFIG_CACHE is not None:
        return _CHIP_CONFIG_CACHE
    try:
        info = pltpu.get_tpu_info()
        hw_vmem = int(getattr(info, "vmem_capacity_bytes", _FALLBACK_HW_VMEM))
    except Exception:
        hw_vmem = _FALLBACK_HW_VMEM
    if hw_vmem <= (64 << 20):
        # v7x-class: 64 MiB VMEM per TC, 2 TCs per chip.
        block_bytes = 4 << 20
        base_limit = 40 << 20
        num_cores = 2
    else:
        # v5e / v6e: 128 MiB VMEM, 1 TC per chip.
        block_bytes = 4 << 20
        base_limit = 64 << 20
        num_cores = 1
    safe_cap = max(base_limit, hw_vmem - (16 << 20))
    _CHIP_CONFIG_CACHE = (block_bytes, base_limit, safe_cap, num_cores)
    return _CHIP_CONFIG_CACHE


def _grouped_split(dims):
    """Return s if dims == (0, s, s+1, ..., n-1, 1, ..., s-1), else None.

    Such permutes (e.g. NCHW->NHWC = (0,2,3,1) and NHWC->NCHW = (0,3,1,2))
    reduce to a batched 2-D transpose of two flattened dim groups.
    """
    n = len(dims)
    if n < 2 or dims[0] != 0:
        return None
    for s in range(2, n):
        if dims[1:] == tuple(range(s, n)) + tuple(range(1, s)):
            return s
    return None


def _largest_divisor_leq(n, cap):
    best = 1
    for d in range(1, n + 1):
        if n % d == 0 and d <= cap:
            best = d
    return best


def _largest_aligned_divisor(dim, unit, limit):
    """Largest divisor of `dim` that is a multiple of `unit` and <= `limit`.

    Falls back to the smallest divisor of `dim` that is a multiple of `unit`
    if none fits under `limit` (only reachable when dim % unit == 0).
    """
    best = None
    smallest = None
    d = unit
    while d <= dim:
        if dim % d == 0:
            if smallest is None:
                smallest = d
            if d <= limit:
                best = d
        d += unit
    return best if best is not None else smallest


def _pick_tiles(n, a, b, itemsize, block_bytes, min_steps):
    """Choose (bn, at, bt) for the tiled (N, A, B) -> (N, B, A) transpose.

    Legality: a tiled (< full) dim on the sublane/lane axes must be a multiple
    of 128 (covers the input lane, output lane, and f32/bf16 sublane rules);
    full dims are always legal.
    """
    elems_budget = max(1, block_bytes // itemsize)

    at, bt = a, b
    if a * b > elems_budget:
        if b % 128 == 0:
            bt = _largest_aligned_divisor(b, 128, max(128, elems_budget // max(a, 1)))
        if a * bt > elems_budget and a % 128 == 0:
            at = _largest_aligned_divisor(a, 128, max(128, elems_budget // max(bt, 1)))
        # If neither dim is 128-aligned we keep full dims (always legal); the
        # caller raises the VMEM limit to cover that (rare, non-ConvNeXt) case.

    # Batch blocking: always fill the byte budget to amortise the ~0.35 us
    # per-grid-step overhead.
    bn = _largest_divisor_leq(n, max(1, elems_budget // (at * bt)))

    def steps(bn_, at_, bt_):
        return (n // bn_) * (a // at_) * (b // bt_)

    # Keep enough independent grid steps for double-buffering on every core.
    while bn > 1 and steps(bn, at, bt) < min_steps:
        bn = _largest_divisor_leq(n, bn - 1)
    while steps(bn, at, bt) < min_steps and bt % 256 == 0:
        bt //= 2
    while steps(bn, at, bt) < min_steps and at % 256 == 0:
        at //= 2
    return bn, at, bt


def _batched_transpose_kernel(x_ref, o_ref):
    # x_ref: (bn, at, bt) -> o_ref: (bn, bt, at); lowers to per-batch XLU
    # transposes of the last two (sublane/lane) dims.
    o_ref[...] = jnp.swapaxes(x_ref[...], 1, 2)


def _batched_transpose(x3, block_bytes):
    """x3: (N, A, B) -> (N, B, A) via a tiled Pallas kernel."""
    n, a, b = x3.shape
    itemsize = x3.dtype.itemsize
    cfg_block, base_limit, safe_cap, num_cores = _chip_config()
    if block_bytes is None:
        block_bytes = cfg_block
    min_steps = max(2, 2 * num_cores)

    bn, at, bt = _pick_tiles(n, a, b, itemsize, block_bytes, min_steps)
    grid = (n // bn, a // at, b // bt)

    # Double-buffered footprint: 2 input tiles + 2 output tiles.
    block_nbytes = bn * at * bt * itemsize
    vmem_limit = min(safe_cap, max(base_limit, 4 * block_nbytes + (2 << 20)))

    total_bytes = n * a * b * itemsize
    cost = pl.CostEstimate(flops=0, transcendentals=0,
                           bytes_accessed=2 * total_bytes)

    return pl.pallas_call(
        _batched_transpose_kernel,
        out_shape=jax.ShapeDtypeStruct((n, b, a), x3.dtype),
        grid=grid,
        in_specs=[pl.BlockSpec((bn, at, bt), lambda i, j, k: (i, j, k))],
        out_specs=pl.BlockSpec((bn, bt, at), lambda i, j, k: (i, k, j)),
        compiler_params=pltpu.CompilerParams(
            dimension_semantics=("parallel", "parallel", "parallel"),
            vmem_limit_bytes=vmem_limit,
        ),
        cost_estimate=cost,
    )(x3)


def _whole_array_permute(x, dims):
    """Fallback for permutes that don't factor into a batched 2-D transpose.

    ConvNeXt never hits this path; the whole tensor is processed as one block.
    """
    # TODO(synk): give exotic (non-grouped) permutes a tiled path; for now we
    # size the VMEM limit to the whole array and rely on it being small.
    out_shape = tuple(x.shape[d] for d in dims)
    _, base_limit, safe_cap, _ = _chip_config()
    nbytes = math.prod(x.shape) * x.dtype.itemsize
    vmem_limit = min(safe_cap, max(base_limit, 4 * nbytes + (2 << 20)))

    def kern(x_ref, o_ref):
        o_ref[...] = jnp.transpose(x_ref[...], dims)

    return pl.pallas_call(
        kern,
        out_shape=jax.ShapeDtypeStruct(out_shape, x.dtype),
        compiler_params=pltpu.CompilerParams(vmem_limit_bytes=vmem_limit),
        cost_estimate=pl.CostEstimate(flops=0, transcendentals=0,
                                      bytes_accessed=2 * nbytes),
    )(x)


def permute_pallas(x, dims, *, block_bytes=None):
    """Pallas equivalent of torch.permute(x, dims)."""
    dims = tuple(int(d) for d in dims)
    assert len(dims) == x.ndim and sorted(dims) == list(range(x.ndim)), dims

    if dims == tuple(range(x.ndim)):            # identity permute
        return x

    s = _grouped_split(dims)
    if s is None:
        return _whole_array_permute(x, dims)

    n = x.shape[0]
    a = math.prod(x.shape[1:s])
    b = math.prod(x.shape[s:])
    out_shape = tuple(x.shape[d] for d in dims)

    # The reshapes below are free (contiguous row-major views at the XLA level).
    y3 = _batched_transpose(x.reshape(n, a, b), block_bytes)
    return y3.reshape(out_shape)


class Permute:
    """Minimal functional stand-in for the PyTorch nn.Module."""

    def __init__(self, dims):
        self.dims = tuple(int(d) for d in dims)

    def __call__(self, x):
        return permute_pallas(x, self.dims)


if __name__ == "__main__":
    key = jax.random.PRNGKey(0)

    # Primary case: ConvNeXt's Permute([0, 2, 3, 1]) on a small NCHW tensor.
    x = jax.random.normal(key, (2, 4, 16, 16), dtype=jnp.float32)
    mod = Permute([0, 2, 3, 1])
    out = jax.block_until_ready(mod(x))
    ref = jnp.transpose(x, (0, 2, 3, 1))
    assert out.shape == ref.shape and out.dtype == ref.dtype
    assert jnp.array_equal(out, ref), "Pallas permute mismatch vs jnp.transpose"

    # Extra coverage (still small shapes):
    #   - the inverse orientation ConvNeXt also uses ([0, 3, 1, 2]),
    #   - a lane-dense-output case (C >= 128),
    #   - a spatial size that is not a multiple of 128 (full-dim blocks),
    #   - a forced tiny block budget to exercise tiling along B (H*W),
    #   - a forced budget + B % 128 != 0 to exercise tiling along A,
    #   - a bf16 case with forced tiling (sub-32-bit sublane packing).
    checks = [
        ((2, 4, 16, 16), (0, 3, 1, 2), jnp.float32, None),
        ((2, 128, 16, 16), (0, 2, 3, 1), jnp.float32, None),
        ((2, 96, 14, 14), (0, 2, 3, 1), jnp.float32, None),
        ((2, 4, 32, 32), (0, 2, 3, 1), jnp.float32, 4 * 1024),
        ((1, 256, 10, 10), (0, 2, 3, 1), jnp.float32, 64 * 1024),
        ((2, 64, 16, 16), (0, 2, 3, 1), jnp.bfloat16, 16 * 1024),
    ]
    for shape, d, dt, bb in checks:
        key, sub = jax.random.split(key)
        xi = jax.random.normal(sub, shape, dtype=jnp.float32).astype(dt)
        oi = jax.block_until_ready(permute_pallas(xi, d, block_bytes=bb))
        ri = jnp.transpose(xi, d)
        assert oi.shape == ri.shape and oi.dtype == ri.dtype, (shape, d, dt)
        assert jnp.array_equal(oi, ri), (shape, d, dt)

    print("KERNEL_OK")
</pallas_src>

<mosaic_0001>
module attributes {stable_mosaic.version = 11 : i64} {
  func.func @_batched_transpose_kernel(%arg0: i32, %arg1: i32, %arg2: i32, %arg3: memref<1x4x128xf32, #tpu.memory_space<vmem>>, %arg4: memref<1x128x4xf32, #tpu.memory_space<vmem>>) attributes {dimension_semantics = [#tpu.dimension_semantics<parallel>, #tpu.dimension_semantics<parallel>, #tpu.dimension_semantics<parallel>], iteration_bounds = array<i64: 2, 1, 2>, scalar_prefetch = 0 : i64, scratch_operands = 0 : i64, tpu.core_type = #tpu.core_type<tc>, window_params = [{transform_indices = @transform_0, window_bounds = array<i64: 1, 4, 128>}, {transform_indices = @transform_1, window_bounds = array<i64: 1, 128, 4>}]} {
    %c0 = arith.constant 0 : index
    %c0_0 = arith.constant 0 : index
    %c0_1 = arith.constant 0 : index
    %0 = vector.load %arg3[%c0, %c0_0, %c0_1] : memref<1x4x128xf32, #tpu.memory_space<vmem>>, vector<1x4x128xf32>
    %1 = tpu.transpose %0, [0, 2, 1] : vector<1x4x128xf32> -> vector<1x128x4xf32>
    %c0_2 = arith.constant 0 : index
    %c0_3 = arith.constant 0 : index
    %c0_4 = arith.constant 0 : index
    %2 = vector.load %arg4[%c0_2, %c0_3, %c0_4] : memref<1x128x4xf32, #tpu.memory_space<vmem>>, vector<1x128x4xf32>
    tpu.vector_store %arg4[%c0_2, %c0_3, %c0_4], %1 {strides = array<i32>} : memref<1x128x4xf32, #tpu.memory_space<vmem>>, vector<1x128x4xf32>,
    return
  }
  func.func @transform_0(%arg0: i32, %arg1: i32, %arg2: i32) -> (i32, i32, i32) {
    %c0_i32 = arith.constant 0 : i32
    return %arg0, %arg1, %arg2 : i32, i32, i32
  }
  func.func @transform_1(%arg0: i32, %arg1: i32, %arg2: i32) -> (i32, i32, i32) {
    %c0_i32 = arith.constant 0 : i32
    return %arg0, %arg2, %arg1 : i32, i32, i32
  }
}

</mosaic_0001>

<bundles_post_ra>
// kernel: tpu_custom_call.1
= control target key start
LH: loop header
LB: loop body
LE: loop exit
PB: predicated region body
PF: predicated region fallthrough
CT: control target
= control target key end

     0   :  { %6 = vsyncpa [#allocation3], 0  ;;  %s695_s0 = inlined_call_operand.hbm [shape: f32[2,4,256], index: 0, kind: input, shape index: {}]   ;;  %s696_s1 = inlined_call_operand.vmem [shape: f32[2,256,4], index: 1, kind: output, shape index: {}]  }
   0x1   :  { %8 = vsyncpa [#allocation3 + $0x1], 0  ;;  %s535_s6 = smov 0   ;;  %s537_s7 = smov 0  }
   0x2   :  { %s539_s8 = smov 0   ;;  %s541_s9 = smov 0  }
   0x3   :  { %s543_s10 = smov 0   ;;  %s545_s11 = smov 0  }
   0x4   :  { %s547_s12 = smov 0   ;;  %s549_s13 = smov 0  }
   0x5 LB: > { %s342_s14 = sadd.s32 4294967295, %s522_s13   ;;  %s26_s15 = sadd.s32 1, %s514_s11  ;;  %s522_s13 = sphi %s549_s13, %s14_s13   ;;  %s518_s12 = sphi %s547_s12, %s706_s12   ;;  %s514_s11 = sphi %s545_s11, %s705_s11   ;;  %s510_s10 = sphi %s543_s10, %s704_s10   ;;  %s506_s9 = sphi %s541_s9, %s703_s9   ;;  %s502_s8 = sphi %s539_s8, %s702_s8   ;;  %s498_s7 = sphi %s537_s7, %s701_s7   ;;  %s494_s6 = sphi %s535_s6, %s700_s6  }
   0x6   : > { %p27_p0 = scmp.ge.s32.totalorder %s26_s15, 2  ;;  %s33_s16 = sadd.s32 1, %s518_s12 }
   0x7   : > { %s44_s17 = sadd.s32 1, %s502_s8  ;;  %p51_p1 = scmp.ne.s32.totalorder %s502_s8, %s498_s7 }
   0x8   : > { %s708_s15 = smov (%p27_p0, %s26_s15), 0  ;;  %s710_s16 = smov (!%p27_p0, %s33_s16), %s518_s12 }
   0x9   : > { %s40_s18 = ssub.s32 %s514_s11, %s708_s15  ;;  %p52_p2 = scmp.eq.s32.totalorder %s522_s13, 0 }
   0xa   : > { %p35_p3 = scmp.ge.s32.totalorder %s710_s16, 2  ;;  %p57_p4 = scmp.ne.s32.totalorder %s498_s7, %s494_s6 }
   0xb   : > { %p586_p5 = por %p52_p2, %p51_p1  ;;  %p58_p6 = scmp.eq.s32.totalorder %s342_s14, 0 }
   0xc   : > { %s712_s16 = smov (%p35_p3, %s710_s16), 0  ;;  %p362_p8 = scmp.lt.s32.totalorder %s522_s13, 4 }
   0xd   : > { %p592_p7 = por %p58_p6, %p57_p4  ;;  %s37_s21 = ssub.s32 %s518_s12, %s712_s16 }
   0xe   : > { %s41_s22 = sor.u32 %s40_s18, %s37_s21  ;;  %s111_s23 = sand.u32 1, %s502_s8  }
   0xf   : > { %p42_p9 = scmp.eq.s32.totalorder %s41_s22, 0  ;;  %s346_s24 = sshll.u32 %s111_s23, 2 }
  0x10   : > { %s347_s25 = sshll.u32 %s518_s12, 1  ;;  %s115_s29 = scalar_lea.vmem [#allocation2], %s346_s24 }
  0x11   : > { %s602_s26 = scalar_select %p42_p9, %s502_s8, %s44_s17  }
  0x12   : > { %s122_s27 = sadd.s32 %s514_s11, %s347_s25  ;;  %s126_s30 = sshll.u32 %s115_s29, 4  ;;  %s127_s30 = int_to_ptr.vmem [resolvable:$true] %s126_s30 }
  0x13   : > { %s348_s28 = sshll.u32 %s122_s27, 6  ;;  %p612_p10 = pnand %p362_p8, %p586_p5 }
  0x14   : > { %s124_s4 = scalar_lea.hbm %s695_s0, %s348_s28  ;;  %p349_p11 = scmp.ge.s32.totalorder %s522_s13, 1 }
  0x15   : > { %p131_p12 = scmp.lt.s32.totalorder %s522_s13, 5  ;;  %s112_s6 = scalar_lea.sflag [#allocation3], %s111_s23 }
  0x16   : > { %p430_p13 = pneg %p612_p10  ;;  %s441_s14 = scalar_lea.vmem %s127_s30, 64 }
  0x17   : > { %p442_p0 = scmp.ne.s32.totalorder %s127_s30, %s441_s14  ;;  %s524_s17 = smov [#allocation2]  }
  0x18   : > { %s446_s18 = sshll.u32 %s524_s17, 4  ;;  %s447_s18 = int_to_ptr.vmem [resolvable:$false] %s446_s18 }
  0x19   : > { %p444_p1 = pnand %p442_p0, %p430_p13  ;;  %s448_s21 = scalar_lea.vmem %s447_s18, 128 }
  0x1a   : > { %p449_p3 = scmp.lt.s32.totalorder %s127_s30, %s447_s18  ;;  %p450_p4 = scmp.lt.s32.totalorder %s448_s21, %s441_s14 }
  0x1b   : > { %p445_p2 = pneg %p444_p1 }
  0x1c   : > { %p451_p5 = por %p450_p4, %p449_p3 }
  0x1e   : > { %p452_p6 = pnand %p451_p5, %p445_p2 }
  0x20   : > { %455 = shalt.err (!%p452_p6)
}
  0x21   : > { %361 = dma.hbm_to_vmem [thread:$0]  (!%p612_p10), %s124_s4, 64, %s127_s30, %s112_s6  }
  0x22   : > { %p132_p8 = pnand %p349_p11, %p131_p12 }
  0x23   : > { %s137_s19 = sand.u32 (!%p132_p8), 1, %s498_s7  }
  0x24   : > { %135 = sbr.rel (%p132_p8) target bundleno = 229 (0xe5), region = 24  ;;  %s350_s22 = sshll.u32 (!%p132_p8), %s137_s19, 2 }
  0x25   : > { %s138_s23 = scalar_lea.sflag (!%p132_p8), [#allocation3], %s137_s19  ;;  %s141_s24 = scalar_lea.vmem (!%p132_p8), [#allocation2], %s350_s22 }
  0x29   : > { %489 = dma.done.wait (%p592_p7), %s138_s23, 64  }
  0x2a   : > { %491 = vsyncadd (%p592_p7), %s138_s23, 4294967232  ;;  %v180_v0 = vld [vmem:[%s141_s24] sm:$0xf]  ;;  %s351_s25 = sshll.u32 %s506_s9, 4  ;;  %p168_p9 = scmp.lt.s32.totalorder %s510_s10, 1  ;;  %vm213_vm0 = vcmask 31744  }
  0x2b   : > { %181 = vxpose.xlu0.b32.start.end [1/1] (short) %v180_v0, 128  ;;  %p170_p10 = scmp.lt.s32.totalorder %s351_s25, 31 }
  0x2c   : > { %s714_s10 = smov (!%p168_p9, %s510_s10), 1 }
  0x2d   : > { %s716_s25 = smov (!%p170_p10, %s351_s25), 31  ;;  %s352_s27 = sshll.u32 %s714_s10, 5 }
  0x2e   : > { %s176_s28 = sadd.s32 %s352_s27, %s716_s25 }
  0x2f   : > { %s353_s29 = sshll.u32 %s176_s28, 3 }
  0x30   : > { %s637_s3 = scalar_lea.vmem %s696_s1, %s353_s29 }
  0xa7   : > { %v197_v1 = vpop.trf.xlu0 }
  0xa8   : > { %214 = vst.msk [vmem:[%s637_s3] sm:$0xff] %vm213_vm0, %v197_v1 }
  0xab   : > { %v198_v2 = vpop.trf.xlu0 }
  0xac   : > { %215 = vst.msk [vmem:[%s637_s3 + $0x8] sm:$0xff] %vm213_vm0, %v198_v2 }
  0xaf   : > { %v199_v3 = vpop.trf.xlu0 }
  0xb0   : > { %216 = vst.msk [vmem:[%s637_s3 + $0x10] sm:$0xff] %vm213_vm0, %v199_v3 }
  0xb3   : > { %v200_v4 = vpop.trf.xlu0 }
  0xb4   : > { %217 = vst.msk [vmem:[%s637_s3 + $0x18] sm:$0xff] %vm213_vm0, %v200_v4 }
  0xb7   : > { %v201_v5 = vpop.trf.xlu0 }
  0xb8   : > { %218 = vst.msk [vmem:[%s637_s3 + $0x20] sm:$0xff] %vm213_vm0, %v201_v5 }
  0xbb   : > { %v202_v6 = vpop.trf.xlu0 }
  0xbc   : > { %219 = vst.msk [vmem:[%s637_s3 + $0x28] sm:$0xff] %vm213_vm0, %v202_v6 }
  0xbf   : > { %v203_v7 = vpop.trf.xlu0 }
  0xc0   : > { %220 = vst.msk [vmem:[%s637_s3 + $0x30] sm:$0xff] %vm213_vm0, %v203_v7 }
  0xc3   : > { %v204_v8 = vpop.trf.xlu0 }
  0xc4   : > { %221 = vst.msk [vmem:[%s637_s3 + $0x38] sm:$0xff] %vm213_vm0, %v204_v8 }
  0xc7   : > { %v205_v9 = vpop.trf.xlu0 }
  0xc8   : > { %222 = vst.msk [vmem:[%s637_s3 + $0x40] sm:$0xff] %vm213_vm0, %v205_v9 }
  0xcb   : > { %v206_v10 = vpop.trf.xlu0 }
  0xcc   : > { %223 = vst.msk [vmem:[%s637_s3 + $0x48] sm:$0xff] %vm213_vm0, %v206_v10 }
  0xcf   : > { %v207_v11 = vpop.trf.xlu0 }
  0xd0   : > { %224 = vst.msk [vmem:[%s637_s3 + $0x50] sm:$0xff] %vm213_vm0, %v207_v11 }
  0xd3   : > { %v208_v12 = vpop.trf.xlu0 }
  0xd4   : > { %225 = vst.msk [vmem:[%s637_s3 + $0x58] sm:$0xff] %vm213_vm0, %v208_v12 }
  0xd7   : > { %v209_v13 = vpop.trf.xlu0 }
  0xd8   : > { %226 = vst.msk [vmem:[%s637_s3 + $0x60] sm:$0xff] %vm213_vm0, %v209_v13 }
  0xdb   : > { %v210_v14 = vpop.trf.xlu0 }
  0xdc   : > { %227 = vst.msk [vmem:[%s637_s3 + $0x68] sm:$0xff] %vm213_vm0, %v210_v14 }
  0xdf   : > { %v211_v15 = vpop.trf.xlu0 }
  0xe0   : > { %228 = vst.msk [vmem:[%s637_s3 + $0x70] sm:$0xff] %vm213_vm0, %v211_v15 }
  0xe3   : > { %v212_v16 = vpop.trf.xlu0 }
  0xe4   : > { %229 = vst.msk [vmem:[%s637_s3 + $0x78] sm:$0xff] %vm213_vm0, %v212_v16 }
  0xe5 PF: > { %s14_s13 = sadd.s32 1, %s522_s13   ;;  %s700_s6 = smov %s498_s7 }
  0xe6   : > { %p11_p7 = scmp.ge.s32.totalorder %s14_s13, 6   ;;  %s701_s7 = smov %s502_s8 }
  0xe7   : > { %s702_s8 = smov %s602_s26  ;;  %s703_s9 = smov %s514_s11 }
  0xe8   : > { %s704_s10 = smov %s518_s12  ;;  %s705_s11 = smov %s708_s15 }
  0xe9   : > { %s706_s12 = smov %s712_s16  ;;  %13 = sbr.rel (!%p11_p7) target bundleno = 5 (0x5), region = 64 }
  0xee   :  { %266 = vsyncpa [#allocation3], 1 }
  0xef   :  { %268 = vsyncpa [#allocation3 + $0x1], 1 }

</bundles_post_ra>
